<compile_context>
chip_gen: v5e
topology: v5e:2x2
jax: 0.10.0
libtpu: 0.0.40
codegen_flags: <defaults>
</compile_context>

<pallas_src>
import functools

import jax
import jax.numpy as jnp
from jax.experimental import pallas as pl
from jax.experimental.pallas import tpu as pltpu

_LANES = 128


def _dice_loss_kernel(pred_ref, target_ref, batch_ref, out_ref,
                      inter_acc, psum_acc, tsum_acc,
                      *, num_segments_padded, smooth, threshold_sum):
    pid = pl.program_id(0)

    @pl.when(pid == 0)
    def _init():
        inter_acc[...] = jnp.zeros_like(inter_acc)
        psum_acc[...] = jnp.zeros_like(psum_acc)
        tsum_acc[...] = jnp.zeros_like(tsum_acc)

    pred = pred_ref[...]          # (tile_rows, 128) f32
    tgt = target_ref[...]         # (tile_rows, 128) f32
    bidx = batch_ref[...]         # (tile_rows, 128) i32 (padding uses an OOR id)

    pt = pred * tgt
    if threshold_sum:
        pval = jnp.where(pred > 0.5, jnp.float32(1.0), jnp.float32(1e-10))
    else:
        pval = pred

    # Per-segment masked partial sums.  Keep one lane-resident (1, 128) row
    # per segment; only the sublane (row) reduce happens per tile, the
    # cross-lane reduce is deferred to the finalize phase.
    for b in range(num_segments_padded):
        m = bidx == b                                                     # bool
        inter_acc[pl.ds(b, 1), :] += jnp.sum(
            jnp.where(m, pt, 0.0), axis=0, keepdims=True)
        psum_acc[pl.ds(b, 1), :] += jnp.sum(
            jnp.where(m, pval, 0.0), axis=0, keepdims=True)
        tsum_acc[pl.ds(b, 1), :] += jnp.sum(
            jnp.where(m, tgt, 0.0), axis=0, keepdims=True)

    @pl.when(pid == pl.num_programs(0) - 1)
    def _finalize():
        inter = jnp.sum(inter_acc[...], axis=-1, keepdims=True)   # (B_pad, 1)
        dp = jnp.sum(psum_acc[...], axis=-1, keepdims=True)       # (B_pad, 1)
        dt = jnp.sum(tsum_acc[...], axis=-1, keepdims=True)       # (B_pad, 1)
        dice = (2.0 * inter + smooth) / (dp + dt + smooth)        # (B_pad, 1)
        # Padded / empty segments give dice == 1 exactly -> contribute 0.
        out_ref[...] = jnp.sum(1.0 - dice, axis=0, keepdims=True)  # (1, 1)


def dice_loss(pred, target, batch, num_segments, smooth=1.0,
              threshold_sum=False, max_tile_rows=512):
    """Pallas TPU DiceLoss.

    Args:
      pred:   (N,) float32 predictions (e.g. sigmoid outputs) per node.
      target: (N,) float32 binary targets per node.
      batch:  (N,) int32 segment (graph) id per node, values in [0, num_segments).
      num_segments: static number of segments B (== max(batch) + 1 in torch).
    Returns:
      scalar float32 loss = sum_b (1 - dice_b)
    """
    n = pred.shape[0]

    # Pad segment count to a sublane multiple; phantom segments contribute 0.
    b_pad = max(8, ((num_segments + 7) // 8) * 8)

    # Dense (rows, 128) packing of the node dimension.
    rows = (n + _LANES - 1) // _LANES
    max_tile_rows = max(8, ((max_tile_rows + 7) // 8) * 8)
    tile_rows = min(max_tile_rows, ((rows + 7) // 8) * 8)
    num_tiles = (rows + tile_rows - 1) // tile_rows
    rows_padded = num_tiles * tile_rows
    n_padded = rows_padded * _LANES

    pred_p = jnp.zeros((n_padded,), jnp.float32).at[:n].set(
        pred.astype(jnp.float32)).reshape(rows_padded, _LANES)
    tgt_p = jnp.zeros((n_padded,), jnp.float32).at[:n].set(
        target.astype(jnp.float32)).reshape(rows_padded, _LANES)
    # Padding lanes get an out-of-range segment id so they never match.
    batch_p = jnp.full((n_padded,), b_pad, jnp.int32).at[:n].set(
        batch.astype(jnp.int32)).reshape(rows_padded, _LANES)

    kernel = functools.partial(
        _dice_loss_kernel,
        num_segments_padded=b_pad,
        smooth=float(smooth),
        threshold_sum=bool(threshold_sum),
    )

    out = pl.pallas_call(
        kernel,
        out_shape=jax.ShapeDtypeStruct((1, 1), jnp.float32),
        grid_spec=pltpu.PrefetchScalarGridSpec(
            num_scalar_prefetch=0,
            grid=(num_tiles,),
            in_specs=[
                pl.BlockSpec((tile_rows, _LANES), lambda i: (i, 0)),
                pl.BlockSpec((tile_rows, _LANES), lambda i: (i, 0)),
                pl.BlockSpec((tile_rows, _LANES), lambda i: (i, 0)),
            ],
            out_specs=pl.BlockSpec((1, 1), lambda i: (0, 0)),
            scratch_shapes=[
                pltpu.VMEM((b_pad, _LANES), jnp.float32),
                pltpu.VMEM((b_pad, _LANES), jnp.float32),
                pltpu.VMEM((b_pad, _LANES), jnp.float32),
            ],
        ),
        compiler_params=pltpu.CompilerParams(
            dimension_semantics=("arbitrary",),
            vmem_limit_bytes=32 * 1024 * 1024,
        ),
    )(pred_p, tgt_p, batch_p)
    return out[0, 0]


def _reference_dice_loss(pred, target, batch, num_segments, smooth=1.0,
                         threshold_sum=False):
    """Plain-JAX reference mirroring the PyTorch module."""
    inter = jax.ops.segment_sum(pred * target, batch, num_segments=num_segments)
    if threshold_sum:
        pred_flag = jnp.where(pred > 0.5, 1.0, 1e-10)
        denom_p = jax.ops.segment_sum(pred_flag, batch, num_segments=num_segments)
    else:
        denom_p = jax.ops.segment_sum(pred, batch, num_segments=num_segments)
    denom_t = jax.ops.segment_sum(target, batch, num_segments=num_segments)
    dice = (2.0 * inter + smooth) / (denom_p + denom_t + smooth)
    return jnp.sum(1.0 - dice)


if __name__ == "__main__":
    key = jax.random.PRNGKey(0)
    k1, k2, k3 = jax.random.split(key, 3)

    # Case 1: lane-aligned N, sublane-aligned B, single grid step.
    N1, B1 = 256, 8
    pred1 = jax.nn.sigmoid(jax.random.normal(k1, (N1,), dtype=jnp.float32))
    target1 = (jax.random.uniform(k2, (N1,)) > 0.5).astype(jnp.float32)
    batch1 = jnp.repeat(jnp.arange(B1, dtype=jnp.int32), N1 // B1)

    for th in (False, True):
        loss = dice_loss(pred1, target1, batch1, num_segments=B1,
                         smooth=1.0, threshold_sum=th)
        jax.block_until_ready(loss)
        ref = _reference_dice_loss(pred1, target1, batch1, B1,
                                   smooth=1.0, threshold_sum=th)
        assert jnp.allclose(loss, ref, rtol=1e-5, atol=1e-5), (th, loss, ref)

    # Case 2: unaligned N, non-multiple-of-8 B, multi-tile grid (accumulation
    # across grid steps + padded-tail masking).
    N2, B2 = 2000, 5
    k4, k5, k6 = jax.random.split(k3, 3)
    pred2 = jax.nn.sigmoid(jax.random.normal(k4, (N2,), dtype=jnp.float32))
    target2 = (jax.random.uniform(k5, (N2,)) > 0.5).astype(jnp.float32)
    batch2 = jnp.sort(jax.random.randint(k6, (N2,), 0, B2).astype(jnp.int32))

    for th in (False, True):
        loss = dice_loss(pred2, target2, batch2, num_segments=B2,
                         smooth=1.0, threshold_sum=th, max_tile_rows=8)
        jax.block_until_ready(loss)
        ref = _reference_dice_loss(pred2, target2, batch2, B2,
                                   smooth=1.0, threshold_sum=th)
        assert jnp.allclose(loss, ref, rtol=1e-5, atol=1e-5), (th, loss, ref)

    print("KERNEL_OK")
</pallas_src>

<mosaic_0001>
module attributes {stable_mosaic.version = 11 : i64} {
  func.func @_dice_loss_kernel(%arg0: i32, %arg1: memref<8x128xf32, #tpu.memory_space<vmem>>, %arg2: memref<8x128xf32, #tpu.memory_space<vmem>>, %arg3: memref<8x128xi32, #tpu.memory_space<vmem>>, %arg4: memref<1x1xf32, #tpu.memory_space<vmem>>, %arg5: memref<8x128xf32, #tpu.memory_space<vmem>>, %arg6: memref<8x128xf32, #tpu.memory_space<vmem>>, %arg7: memref<8x128xf32, #tpu.memory_space<vmem>>) attributes {dimension_semantics = [#tpu.dimension_semantics<arbitrary>], iteration_bounds = array<i64: 1>, scalar_prefetch = 0 : i64, scratch_operands = 3 : i64, tpu.core_type = #tpu.core_type<tc>, window_params = [{transform_indices = @transform_0, window_bounds = array<i64: 8, 128>}, {transform_indices = @transform_1, window_bounds = array<i64: 8, 128>}, {transform_indices = @transform_2, window_bounds = array<i64: 8, 128>}, {pipeline_mode = #tpu.pipeline_mode<synchronous>, transform_indices = @transform_3, window_bounds = array<i64: 1, 1>}]} {
    %c0_i32 = arith.constant 0 : i32
    %0 = arith.cmpi eq, %arg0, %c0_i32 : i32
    %1 = arith.extui %0 : i1 to i32
    %c0_i32_0 = arith.constant 0 : i32
    %2 = arith.cmpi ne, %1, %c0_i32_0 : i32
    scf.if %2 {
      %cst_145 = arith.constant 0.000000e+00 : f32
      %194 = vector.broadcast %cst_145 : f32 to vector<8x128xf32>
      %c0_146 = arith.constant 0 : index
      %c0_147 = arith.constant 0 : index
      %195 = vector.load %arg5[%c0_146, %c0_147] : memref<8x128xf32, #tpu.memory_space<vmem>>, vector<8x128xf32>
      tpu.vector_store %arg5[%c0_146, %c0_147], %194 {strides = array<i32>} : memref<8x128xf32, #tpu.memory_space<vmem>>, vector<8x128xf32>,
      %cst_148 = arith.constant 0.000000e+00 : f32
      %196 = vector.broadcast %cst_148 : f32 to vector<8x128xf32>
      %c0_149 = arith.constant 0 : index
      %c0_150 = arith.constant 0 : index
      %197 = vector.load %arg6[%c0_149, %c0_150] : memref<8x128xf32, #tpu.memory_space<vmem>>, vector<8x128xf32>
      tpu.vector_store %arg6[%c0_149, %c0_150], %196 {strides = array<i32>} : memref<8x128xf32, #tpu.memory_space<vmem>>, vector<8x128xf32>,
      %cst_151 = arith.constant 0.000000e+00 : f32
      %198 = vector.broadcast %cst_151 : f32 to vector<8x128xf32>
      %c0_152 = arith.constant 0 : index
      %c0_153 = arith.constant 0 : index
      %199 = vector.load %arg7[%c0_152, %c0_153] : memref<8x128xf32, #tpu.memory_space<vmem>>, vector<8x128xf32>
      tpu.vector_store %arg7[%c0_152, %c0_153], %198 {strides = array<i32>} : memref<8x128xf32, #tpu.memory_space<vmem>>, vector<8x128xf32>,
    } else {
    }
    %c0 = arith.constant 0 : index
    %c0_1 = arith.constant 0 : index
    %3 = vector.load %arg1[%c0, %c0_1] : memref<8x128xf32, #tpu.memory_space<vmem>>, vector<8x128xf32>
    %c0_2 = arith.constant 0 : index
    %c0_3 = arith.constant 0 : index
    %4 = vector.load %arg2[%c0_2, %c0_3] : memref<8x128xf32, #tpu.memory_space<vmem>>, vector<8x128xf32>
    %c0_4 = arith.constant 0 : index
    %c0_5 = arith.constant 0 : index
    %5 = vector.load %arg3[%c0_4, %c0_5] : memref<8x128xi32, #tpu.memory_space<vmem>>, vector<8x128xi32>
    %6 = arith.mulf %3, %4 : vector<8x128xf32>
    %c0_i32_6 = arith.constant 0 : i32
    %7 = vector.broadcast %c0_i32_6 : i32 to vector<8x128xi32>
    %8 = arith.cmpi eq, %5, %7 : vector<8x128xi32>
    %c0_7 = arith.constant 0 : index
    %c0_8 = arith.constant 0 : index
    %9 = vector.load %arg5[%c0_7, %c0_8] : memref<8x128xf32, #tpu.memory_space<vmem>>, vector<1x128xf32>
    %cst = arith.constant 0.000000e+00 : f32
    %10 = vector.broadcast %cst : f32 to vector<8x128xf32>
    %11 = arith.select %8, %6, %10 : vector<8x128xi1>, vector<8x128xf32>
    %cst_9 = arith.constant dense<0.000000e+00> : vector<128xf32>
    %12 = vector.multi_reduction <add>, %11, %cst_9 [0] : vector<8x128xf32> to vector<128xf32>
    %13 = vector.shape_cast %12 : vector<128xf32> to vector<1x128xf32>
    %14 = arith.addf %9, %13 : vector<1x128xf32>
    %c0_10 = arith.constant 0 : index
    %c0_11 = arith.constant 0 : index
    %15 = vector.load %arg5[%c0_10, %c0_11] : memref<8x128xf32, #tpu.memory_space<vmem>>, vector<1x128xf32>
    tpu.vector_store %arg5[%c0_10, %c0_11], %14 {strides = array<i32>} : memref<8x128xf32, #tpu.memory_space<vmem>>, vector<1x128xf32>,
    %c0_12 = arith.constant 0 : index
    %c0_13 = arith.constant 0 : index
    %16 = vector.load %arg6[%c0_12, %c0_13] : memref<8x128xf32, #tpu.memory_space<vmem>>, vector<1x128xf32>
    %cst_14 = arith.constant 0.000000e+00 : f32
    %17 = vector.broadcast %cst_14 : f32 to vector<8x128xf32>
    %18 = arith.select %8, %3, %17 : vector<8x128xi1>, vector<8x128xf32>
    %cst_15 = arith.constant dense<0.000000e+00> : vector<128xf32>
    %19 = vector.multi_reduction <add>, %18, %cst_15 [0] : vector<8x128xf32> to vector<128xf32>
    %20 = vector.shape_cast %19 : vector<128xf32> to vector<1x128xf32>
    %21 = arith.addf %16, %20 : vector<1x128xf32>
    %c0_16 = arith.constant 0 : index
    %c0_17 = arith.constant 0 : index
    %22 = vector.load %arg6[%c0_16, %c0_17] : memref<8x128xf32, #tpu.memory_space<vmem>>, vector<1x128xf32>
    tpu.vector_store %arg6[%c0_16, %c0_17], %21 {strides = array<i32>} : memref<8x128xf32, #tpu.memory_space<vmem>>, vector<1x128xf32>,
    %c0_18 = arith.constant 0 : index
    %c0_19 = arith.constant 0 : index
    %23 = vector.load %arg7[%c0_18, %c0_19] : memref<8x128xf32, #tpu.memory_space<vmem>>, vector<1x128xf32>
    %cst_20 = arith.constant 0.000000e+00 : f32
    %24 = vector.broadcast %cst_20 : f32 to vector<8x128xf32>
    %25 = arith.select %8, %4, %24 : vector<8x128xi1>, vector<8x128xf32>
    %cst_21 = arith.constant dense<0.000000e+00> : vector<128xf32>
    %26 = vector.multi_reduction <add>, %25, %cst_21 [0] : vector<8x128xf32> to vector<128xf32>
    %27 = vector.shape_cast %26 : vector<128xf32> to vector<1x128xf32>
    %28 = arith.addf %23, %27 : vector<1x128xf32>
    %c0_22 = arith.constant 0 : index
    %c0_23 = arith.constant 0 : index
    %29 = vector.load %arg7[%c0_22, %c0_23] : memref<8x128xf32, #tpu.memory_space<vmem>>, vector<1x128xf32>
    tpu.vector_store %arg7[%c0_22, %c0_23], %28 {strides = array<i32>} : memref<8x128xf32, #tpu.memory_space<vmem>>, vector<1x128xf32>,
    %c1_i32 = arith.constant 1 : i32
    %30 = vector.broadcast %c1_i32 : i32 to vector<8x128xi32>
    %31 = arith.cmpi eq, %5, %30 : vector<8x128xi32>
    %c1 = arith.constant 1 : index
    %c0_24 = arith.constant 0 : index
    %32 = vector.load %arg5[%c1, %c0_24] : memref<8x128xf32, #tpu.memory_space<vmem>>, vector<1x128xf32>
    %cst_25 = arith.constant 0.000000e+00 : f32
    %33 = vector.broadcast %cst_25 : f32 to vector<8x128xf32>
    %34 = arith.select %31, %6, %33 : vector<8x128xi1>, vector<8x128xf32>
    %cst_26 = arith.constant dense<0.000000e+00> : vector<128xf32>
    %35 = vector.multi_reduction <add>, %34, %cst_26 [0] : vector<8x128xf32> to vector<128xf32>
    %36 = vector.shape_cast %35 : vector<128xf32> to vector<1x128xf32>
    %37 = arith.addf %32, %36 : vector<1x128xf32>
    %c1_27 = arith.constant 1 : index
    %c0_28 = arith.constant 0 : index
    %38 = vector.load %arg5[%c1_27, %c0_28] : memref<8x128xf32, #tpu.memory_space<vmem>>, vector<1x128xf32>
    tpu.vector_store %arg5[%c1_27, %c0_28], %37 {strides = array<i32>} : memref<8x128xf32, #tpu.memory_space<vmem>>, vector<1x128xf32>,
    %c1_29 = arith.constant 1 : index
    %c0_30 = arith.constant 0 : index
    %39 = vector.load %arg6[%c1_29, %c0_30] : memref<8x128xf32, #tpu.memory_space<vmem>>, vector<1x128xf32>
    %cst_31 = arith.constant 0.000000e+00 : f32
    %40 = vector.broadcast %cst_31 : f32 to vector<8x128xf32>
    %41 = arith.select %31, %3, %40 : vector<8x128xi1>, vector<8x128xf32>
    %cst_32 = arith.constant dense<0.000000e+00> : vector<128xf32>
    %42 = vector.multi_reduction <add>, %41, %cst_32 [0] : vector<8x128xf32> to vector<128xf32>
    %43 = vector.shape_cast %42 : vector<128xf32> to vector<1x128xf32>
    %44 = arith.addf %39, %43 : vector<1x128xf32>
    %c1_33 = arith.constant 1 : index
    %c0_34 = arith.constant 0 : index
    %45 = vector.load %arg6[%c1_33, %c0_34] : memref<8x128xf32, #tpu.memory_space<vmem>>, vector<1x128xf32>
    tpu.vector_store %arg6[%c1_33, %c0_34], %44 {strides = array<i32>} : memref<8x128xf32, #tpu.memory_space<vmem>>, vector<1x128xf32>,
    %c1_35 = arith.constant 1 : index
    %c0_36 = arith.constant 0 : index
    %46 = vector.load %arg7[%c1_35, %c0_36] : memref<8x128xf32, #tpu.memory_space<vmem>>, vector<1x128xf32>
    %cst_37 = arith.constant 0.000000e+00 : f32
    %47 = vector.broadcast %cst_37 : f32 to vector<8x128xf32>
    %48 = arith.select %31, %4, %47 : vector<8x128xi1>, vector<8x128xf32>
    %cst_38 = arith.constant dense<0.000000e+00> : vector<128xf32>
    %49 = vector.multi_reduction <add>, %48, %cst_38 [0] : vector<8x128xf32> to vector<128xf32>
    %50 = vector.shape_cast %49 : vector<128xf32> to vector<1x128xf32>
    %51 = arith.addf %46, %50 : vector<1x128xf32>
    %c1_39 = arith.constant 1 : index
    %c0_40 = arith.constant 0 : index
    %52 = vector.load %arg7[%c1_39, %c0_40] : memref<8x128xf32, #tpu.memory_space<vmem>>, vector<1x128xf32>
    tpu.vector_store %arg7[%c1_39, %c0_40], %51 {strides = array<i32>} : memref<8x128xf32, #tpu.memory_space<vmem>>, vector<1x128xf32>,
    %c2_i32 = arith.constant 2 : i32
    %53 = vector.broadcast %c2_i32 : i32 to vector<8x128xi32>
    %54 = arith.cmpi eq, %5, %53 : vector<8x128xi32>
    %c2 = arith.constant 2 : index
    %c0_41 = arith.constant 0 : index
    %55 = vector.load %arg5[%c2, %c0_41] : memref<8x128xf32, #tpu.memory_space<vmem>>, vector<1x128xf32>
    %cst_42 = arith.constant 0.000000e+00 : f32
    %56 = vector.broadcast %cst_42 : f32 to vector<8x128xf32>
    %57 = arith.select %54, %6, %56 : vector<8x128xi1>, vector<8x128xf32>
    %cst_43 = arith.constant dense<0.000000e+00> : vector<128xf32>
    %58 = vector.multi_reduction <add>, %57, %cst_43 [0] : vector<8x128xf32> to vector<128xf32>
    %59 = vector.shape_cast %58 : vector<128xf32> to vector<1x128xf32>
    %60 = arith.addf %55, %59 : vector<1x128xf32>
    %c2_44 = arith.constant 2 : index
    %c0_45 = arith.constant 0 : index
    %61 = vector.load %arg5[%c2_44, %c0_45] : memref<8x128xf32, #tpu.memory_space<vmem>>, vector<1x128xf32>
    tpu.vector_store %arg5[%c2_44, %c0_45], %60 {strides = array<i32>} : memref<8x128xf32, #tpu.memory_space<vmem>>, vector<1x128xf32>,
    %c2_46 = arith.constant 2 : index
    %c0_47 = arith.constant 0 : index
    %62 = vector.load %arg6[%c2_46, %c0_47] : memref<8x128xf32, #tpu.memory_space<vmem>>, vector<1x128xf32>
    %cst_48 = arith.constant 0.000000e+00 : f32
    %63 = vector.broadcast %cst_48 : f32 to vector<8x128xf32>
    %64 = arith.select %54, %3, %63 : vector<8x128xi1>, vector<8x128xf32>
    %cst_49 = arith.constant dense<0.000000e+00> : vector<128xf32>
    %65 = vector.multi_reduction <add>, %64, %cst_49 [0] : vector<8x128xf32> to vector<128xf32>
    %66 = vector.shape_cast %65 : vector<128xf32> to vector<1x128xf32>
    %67 = arith.addf %62, %66 : vector<1x128xf32>
    %c2_50 = arith.constant 2 : index
    %c0_51 = arith.constant 0 : index
    %68 = vector.load %arg6[%c2_50, %c0_51] : memref<8x128xf32, #tpu.memory_space<vmem>>, vector<1x128xf32>
    tpu.vector_store %arg6[%c2_50, %c0_51], %67 {strides = array<i32>} : memref<8x128xf32, #tpu.memory_space<vmem>>, vector<1x128xf32>,
    %c2_52 = arith.constant 2 : index
    %c0_53 = arith.constant 0 : index
    %69 = vector.load %arg7[%c2_52, %c0_53] : memref<8x128xf32, #tpu.memory_space<vmem>>, vector<1x128xf32>
    %cst_54 = arith.constant 0.000000e+00 : f32
    %70 = vector.broadcast %cst_54 : f32 to vector<8x128xf32>
    %71 = arith.select %54, %4, %70 : vector<8x128xi1>, vector<8x128xf32>
    %cst_55 = arith.constant dense<0.000000e+00> : vector<128xf32>
    %72 = vector.multi_reduction <add>, %71, %cst_55 [0] : vector<8x128xf32> to vector<128xf32>
    %73 = vector.shape_cast %72 : vector<128xf32> to vector<1x128xf32>
    %74 = arith.addf %69, %73 : vector<1x128xf32>
    %c2_56 = arith.constant 2 : index
    %c0_57 = arith.constant 0 : index
    %75 = vector.load %arg7[%c2_56, %c0_57] : memref<8x128xf32, #tpu.memory_space<vmem>>, vector<1x128xf32>
    tpu.vector_store %arg7[%c2_56, %c0_57], %74 {strides = array<i32>} : memref<8x128xf32, #tpu.memory_space<vmem>>, vector<1x128xf32>,
    %c3_i32 = arith.constant 3 : i32
    %76 = vector.broadcast %c3_i32 : i32 to vector<8x128xi32>
    %77 = arith.cmpi eq, %5, %76 : vector<8x128xi32>
    %c3 = arith.constant 3 : index
    %c0_58 = arith.constant 0 : index
    %78 = vector.load %arg5[%c3, %c0_58] : memref<8x128xf32, #tpu.memory_space<vmem>>, vector<1x128xf32>
    %cst_59 = arith.constant 0.000000e+00 : f32
    %79 = vector.broadcast %cst_59 : f32 to vector<8x128xf32>
    %80 = arith.select %77, %6, %79 : vector<8x128xi1>, vector<8x128xf32>
    %cst_60 = arith.constant dense<0.000000e+00> : vector<128xf32>
    %81 = vector.multi_reduction <add>, %80, %cst_60 [0] : vector<8x128xf32> to vector<128xf32>
    %82 = vector.shape_cast %81 : vector<128xf32> to vector<1x128xf32>
    %83 = arith.addf %78, %82 : vector<1x128xf32>
    %c3_61 = arith.constant 3 : index
    %c0_62 = arith.constant 0 : index
    %84 = vector.load %arg5[%c3_61, %c0_62] : memref<8x128xf32, #tpu.memory_space<vmem>>, vector<1x128xf32>
    tpu.vector_store %arg5[%c3_61, %c0_62], %83 {strides = array<i32>} : memref<8x128xf32, #tpu.memory_space<vmem>>, vector<1x128xf32>,
    %c3_63 = arith.constant 3 : index
    %c0_64 = arith.constant 0 : index
    %85 = vector.load %arg6[%c3_63, %c0_64] : memref<8x128xf32, #tpu.memory_space<vmem>>, vector<1x128xf32>
    %cst_65 = arith.constant 0.000000e+00 : f32
    %86 = vector.broadcast %cst_65 : f32 to vector<8x128xf32>
    %87 = arith.select %77, %3, %86 : vector<8x128xi1>, vector<8x128xf32>
    %cst_66 = arith.constant dense<0.000000e+00> : vector<128xf32>
    %88 = vector.multi_reduction <add>, %87, %cst_66 [0] : vector<8x128xf32> to vector<128xf32>
    %89 = vector.shape_cast %88 : vector<128xf32> to vector<1x128xf32>
    %90 = arith.addf %85, %89 : vector<1x128xf32>
    %c3_67 = arith.constant 3 : index
    %c0_68 = arith.constant 0 : index
    %91 = vector.load %arg6[%c3_67, %c0_68] : memref<8x128xf32, #tpu.memory_space<vmem>>, vector<1x128xf32>
    tpu.vector_store %arg6[%c3_67, %c0_68], %90 {strides = array<i32>} : memref<8x128xf32, #tpu.memory_space<vmem>>, vector<1x128xf32>,
    %c3_69 = arith.constant 3 : index
    %c0_70 = arith.constant 0 : index
    %92 = vector.load %arg7[%c3_69, %c0_70] : memref<8x128xf32, #tpu.memory_space<vmem>>, vector<1x128xf32>
    %cst_71 = arith.constant 0.000000e+00 : f32
    %93 = vector.broadcast %cst_71 : f32 to vector<8x128xf32>
    %94 = arith.select %77, %4, %93 : vector<8x128xi1>, vector<8x128xf32>
    %cst_72 = arith.constant dense<0.000000e+00> : vector<128xf32>
    %95 = vector.multi_reduction <add>, %94, %cst_72 [0] : vector<8x128xf32> to vector<128xf32>
    %96 = vector.shape_cast %95 : vector<128xf32> to vector<1x128xf32>
    %97 = arith.addf %92, %96 : vector<1x128xf32>
    %c3_73 = arith.constant 3 : index
    %c0_74 = arith.constant 0 : index
    %98 = vector.load %arg7[%c3_73, %c0_74] : memref<8x128xf32, #tpu.memory_space<vmem>>, vector<1x128xf32>
    tpu.vector_store %arg7[%c3_73, %c0_74], %97 {strides = array<i32>} : memref<8x128xf32, #tpu.memory_space<vmem>>, vector<1x128xf32>,
    %c4_i32 = arith.constant 4 : i32
    %99 = vector.broadcast %c4_i32 : i32 to vector<8x128xi32>
    %100 = arith.cmpi eq, %5, %99 : vector<8x128xi32>
    %c4 = arith.constant 4 : index
    %c0_75 = arith.constant 0 : index
    %101 = vector.load %arg5[%c4, %c0_75] : memref<8x128xf32, #tpu.memory_space<vmem>>, vector<1x128xf32>
    %cst_76 = arith.constant 0.000000e+00 : f32
    %102 = vector.broadcast %cst_76 : f32 to vector<8x128xf32>
    %103 = arith.select %100, %6, %102 : vector<8x128xi1>, vector<8x128xf32>
    %cst_77 = arith.constant dense<0.000000e+00> : vector<128xf32>
    %104 = vector.multi_reduction <add>, %103, %cst_77 [0] : vector<8x128xf32> to vector<128xf32>
    %105 = vector.shape_cast %104 : vector<128xf32> to vector<1x128xf32>
    %106 = arith.addf %101, %105 : vector<1x128xf32>
    %c4_78 = arith.constant 4 : index
    %c0_79 = arith.constant 0 : index
    %107 = vector.load %arg5[%c4_78, %c0_79] : memref<8x128xf32, #tpu.memory_space<vmem>>, vector<1x128xf32>
    tpu.vector_store %arg5[%c4_78, %c0_79], %106 {strides = array<i32>} : memref<8x128xf32, #tpu.memory_space<vmem>>, vector<1x128xf32>,
    %c4_80 = arith.constant 4 : index
    %c0_81 = arith.constant 0 : index
    %108 = vector.load %arg6[%c4_80, %c0_81] : memref<8x128xf32, #tpu.memory_space<vmem>>, vector<1x128xf32>
    %cst_82 = arith.constant 0.000000e+00 : f32
    %109 = vector.broadcast %cst_82 : f32 to vector<8x128xf32>
    %110 = arith.select %100, %3, %109 : vector<8x128xi1>, vector<8x128xf32>
    %cst_83 = arith.constant dense<0.000000e+00> : vector<128xf32>
    %111 = vector.multi_reduction <add>, %110, %cst_83 [0] : vector<8x128xf32> to vector<128xf32>
    %112 = vector.shape_cast %111 : vector<128xf32> to vector<1x128xf32>
    %113 = arith.addf %108, %112 : vector<1x128xf32>
    %c4_84 = arith.constant 4 : index
    %c0_85 = arith.constant 0 : index
    %114 = vector.load %arg6[%c4_84, %c0_85] : memref<8x128xf32, #tpu.memory_space<vmem>>, vector<1x128xf32>
    tpu.vector_store %arg6[%c4_84, %c0_85], %113 {strides = array<i32>} : memref<8x128xf32, #tpu.memory_space<vmem>>, vector<1x128xf32>,
    %c4_86 = arith.constant 4 : index
    %c0_87 = arith.constant 0 : index
    %115 = vector.load %arg7[%c4_86, %c0_87] : memref<8x128xf32, #tpu.memory_space<vmem>>, vector<1x128xf32>
    %cst_88 = arith.constant 0.000000e+00 : f32
    %116 = vector.broadcast %cst_88 : f32 to vector<8x128xf32>
    %117 = arith.select %100, %4, %116 : vector<8x128xi1>, vector<8x128xf32>
    %cst_89 = arith.constant dense<0.000000e+00> : vector<128xf32>
    %118 = vector.multi_reduction <add>, %117, %cst_89 [0] : vector<8x128xf32> to vector<128xf32>
    %119 = vector.shape_cast %118 : vector<128xf32> to vector<1x128xf32>
    %120 = arith.addf %115, %119 : vector<1x128xf32>
    %c4_90 = arith.constant 4 : index
    %c0_91 = arith.constant 0 : index
    %121 = vector.load %arg7[%c4_90, %c0_91] : memref<8x128xf32, #tpu.memory_space<vmem>>, vector<1x128xf32>
    tpu.vector_store %arg7[%c4_90, %c0_91], %120 {strides = array<i32>} : memref<8x128xf32, #tpu.memory_space<vmem>>, vector<1x128xf32>,
    %c5_i32 = arith.constant 5 : i32
    %122 = vector.broadcast %c5_i32 : i32 to vector<8x128xi32>
    %123 = arith.cmpi eq, %5, %122 : vector<8x128xi32>
    %c5 = arith.constant 5 : index
    %c0_92 = arith.constant 0 : index
    %124 = vector.load %arg5[%c5, %c0_92] : memref<8x128xf32, #tpu.memory_space<vmem>>, vector<1x128xf32>
    %cst_93 = arith.constant 0.000000e+00 : f32
    %125 = vector.broadcast %cst_93 : f32 to vector<8x128xf32>
    %126 = arith.select %123, %6, %125 : vector<8x128xi1>, vector<8x128xf32>
    %cst_94 = arith.constant dense<0.000000e+00> : vector<128xf32>
    %127 = vector.multi_reduction <add>, %126, %cst_94 [0] : vector<8x128xf32> to vector<128xf32>
    %128 = vector.shape_cast %127 : vector<128xf32> to vector<1x128xf32>
    %129 = arith.addf %124, %128 : vector<1x128xf32>
    %c5_95 = arith.constant 5 : index
    %c0_96 = arith.constant 0 : index
    %130 = vector.load %arg5[%c5_95, %c0_96] : memref<8x128xf32, #tpu.memory_space<vmem>>, vector<1x128xf32>
    tpu.vector_store %arg5[%c5_95, %c0_96], %129 {strides = array<i32>} : memref<8x128xf32, #tpu.memory_space<vmem>>, vector<1x128xf32>,
    %c5_97 = arith.constant 5 : index
    %c0_98 = arith.constant 0 : index
    %131 = vector.load %arg6[%c5_97, %c0_98] : memref<8x128xf32, #tpu.memory_space<vmem>>, vector<1x128xf32>
    %cst_99 = arith.constant 0.000000e+00 : f32
    %132 = vector.broadcast %cst_99 : f32 to vector<8x128xf32>
    %133 = arith.select %123, %3, %132 : vector<8x128xi1>, vector<8x128xf32>
    %cst_100 = arith.constant dense<0.000000e+00> : vector<128xf32>
    %134 = vector.multi_reduction <add>, %133, %cst_100 [0] : vector<8x128xf32> to vector<128xf32>
    %135 = vector.shape_cast %134 : vector<128xf32> to vector<1x128xf32>
    %136 = arith.addf %131, %135 : vector<1x128xf32>
    %c5_101 = arith.constant 5 : index
    %c0_102 = arith.constant 0 : index
    %137 = vector.load %arg6[%c5_101, %c0_102] : memref<8x128xf32, #tpu.memory_space<vmem>>, vector<1x128xf32>
    tpu.vector_store %arg6[%c5_101, %c0_102], %136 {strides = array<i32>} : memref<8x128xf32, #tpu.memory_space<vmem>>, vector<1x128xf32>,
    %c5_103 = arith.constant 5 : index
    %c0_104 = arith.constant 0 : index
    %138 = vector.load %arg7[%c5_103, %c0_104] : memref<8x128xf32, #tpu.memory_space<vmem>>, vector<1x128xf32>
    %cst_105 = arith.constant 0.000000e+00 : f32
    %139 = vector.broadcast %cst_105 : f32 to vector<8x128xf32>
    %140 = arith.select %123, %4, %139 : vector<8x128xi1>, vector<8x128xf32>
    %cst_106 = arith.constant dense<0.000000e+00> : vector<128xf32>
    %141 = vector.multi_reduction <add>, %140, %cst_106 [0] : vector<8x128xf32> to vector<128xf32>
    %142 = vector.shape_cast %141 : vector<128xf32> to vector<1x128xf32>
    %143 = arith.addf %138, %142 : vector<1x128xf32>
    %c5_107 = arith.constant 5 : index
    %c0_108 = arith.constant 0 : index
    %144 = vector.load %arg7[%c5_107, %c0_108] : memref<8x128xf32, #tpu.memory_space<vmem>>, vector<1x128xf32>
    tpu.vector_store %arg7[%c5_107, %c0_108], %143 {strides = array<i32>} : memref<8x128xf32, #tpu.memory_space<vmem>>, vector<1x128xf32>,
    %c6_i32 = arith.constant 6 : i32
    %145 = vector.broadcast %c6_i32 : i32 to vector<8x128xi32>
    %146 = arith.cmpi eq, %5, %145 : vector<8x128xi32>
    %c6 = arith.constant 6 : index
    %c0_109 = arith.constant 0 : index
    %147 = vector.load %arg5[%c6, %c0_109] : memref<8x128xf32, #tpu.memory_space<vmem>>, vector<1x128xf32>
    %cst_110 = arith.constant 0.000000e+00 : f32
    %148 = vector.broadcast %cst_110 : f32 to vector<8x128xf32>
    %149 = arith.select %146, %6, %148 : vector<8x128xi1>, vector<8x128xf32>
    %cst_111 = arith.constant dense<0.000000e+00> : vector<128xf32>
    %150 = vector.multi_reduction <add>, %149, %cst_111 [0] : vector<8x128xf32> to vector<128xf32>
    %151 = vector.shape_cast %150 : vector<128xf32> to vector<1x128xf32>
    %152 = arith.addf %147, %151 : vector<1x128xf32>
    %c6_112 = arith.constant 6 : index
    %c0_113 = arith.constant 0 : index
    %153 = vector.load %arg5[%c6_112, %c0_113] : memref<8x128xf32, #tpu.memory_space<vmem>>, vector<1x128xf32>
    tpu.vector_store %arg5[%c6_112, %c0_113], %152 {strides = array<i32>} : memref<8x128xf32, #tpu.memory_space<vmem>>, vector<1x128xf32>,
    %c6_114 = arith.constant 6 : index
    %c0_115 = arith.constant 0 : index
    %154 = vector.load %arg6[%c6_114, %c0_115] : memref<8x128xf32, #tpu.memory_space<vmem>>, vector<1x128xf32>
    %cst_116 = arith.constant 0.000000e+00 : f32
    %155 = vector.broadcast %cst_116 : f32 to vector<8x128xf32>
    %156 = arith.select %146, %3, %155 : vector<8x128xi1>, vector<8x128xf32>
    %cst_117 = arith.constant dense<0.000000e+00> : vector<128xf32>
    %157 = vector.multi_reduction <add>, %156, %cst_117 [0] : vector<8x128xf32> to vector<128xf32>
    %158 = vector.shape_cast %157 : vector<128xf32> to vector<1x128xf32>
    %159 = arith.addf %154, %158 : vector<1x128xf32>
    %c6_118 = arith.constant 6 : index
    %c0_119 = arith.constant 0 : index
    %160 = vector.load %arg6[%c6_118, %c0_119] : memref<8x128xf32, #tpu.memory_space<vmem>>, vector<1x128xf32>
    tpu.vector_store %arg6[%c6_118, %c0_119], %159 {strides = array<i32>} : memref<8x128xf32, #tpu.memory_space<vmem>>, vector<1x128xf32>,
    %c6_120 = arith.constant 6 : index
    %c0_121 = arith.constant 0 : index
    %161 = vector.load %arg7[%c6_120, %c0_121] : memref<8x128xf32, #tpu.memory_space<vmem>>, vector<1x128xf32>
    %cst_122 = arith.constant 0.000000e+00 : f32
    %162 = vector.broadcast %cst_122 : f32 to vector<8x128xf32>
    %163 = arith.select %146, %4, %162 : vector<8x128xi1>, vector<8x128xf32>
    %cst_123 = arith.constant dense<0.000000e+00> : vector<128xf32>
    %164 = vector.multi_reduction <add>, %163, %cst_123 [0] : vector<8x128xf32> to vector<128xf32>
    %165 = vector.shape_cast %164 : vector<128xf32> to vector<1x128xf32>
    %166 = arith.addf %161, %165 : vector<1x128xf32>
    %c6_124 = arith.constant 6 : index
    %c0_125 = arith.constant 0 : index
    %167 = vector.load %arg7[%c6_124, %c0_125] : memref<8x128xf32, #tpu.memory_space<vmem>>, vector<1x128xf32>
    tpu.vector_store %arg7[%c6_124, %c0_125], %166 {strides = array<i32>} : memref<8x128xf32, #tpu.memory_space<vmem>>, vector<1x128xf32>,
    %c7_i32 = arith.constant 7 : i32
    %168 = vector.broadcast %c7_i32 : i32 to vector<8x128xi32>
    %169 = arith.cmpi eq, %5, %168 : vector<8x128xi32>
    %c7 = arith.constant 7 : index
    %c0_126 = arith.constant 0 : index
    %170 = vector.load %arg5[%c7, %c0_126] : memref<8x128xf32, #tpu.memory_space<vmem>>, vector<1x128xf32>
    %cst_127 = arith.constant 0.000000e+00 : f32
    %171 = vector.broadcast %cst_127 : f32 to vector<8x128xf32>
    %172 = arith.select %169, %6, %171 : vector<8x128xi1>, vector<8x128xf32>
    %cst_128 = arith.constant dense<0.000000e+00> : vector<128xf32>
    %173 = vector.multi_reduction <add>, %172, %cst_128 [0] : vector<8x128xf32> to vector<128xf32>
    %174 = vector.shape_cast %173 : vector<128xf32> to vector<1x128xf32>
    %175 = arith.addf %170, %174 : vector<1x128xf32>
    %c7_129 = arith.constant 7 : index
    %c0_130 = arith.constant 0 : index
    %176 = vector.load %arg5[%c7_129, %c0_130] : memref<8x128xf32, #tpu.memory_space<vmem>>, vector<1x128xf32>
    tpu.vector_store %arg5[%c7_129, %c0_130], %175 {strides = array<i32>} : memref<8x128xf32, #tpu.memory_space<vmem>>, vector<1x128xf32>,
    %c7_131 = arith.constant 7 : index
    %c0_132 = arith.constant 0 : index
    %177 = vector.load %arg6[%c7_131, %c0_132] : memref<8x128xf32, #tpu.memory_space<vmem>>, vector<1x128xf32>
    %cst_133 = arith.constant 0.000000e+00 : f32
    %178 = vector.broadcast %cst_133 : f32 to vector<8x128xf32>
    %179 = arith.select %169, %3, %178 : vector<8x128xi1>, vector<8x128xf32>
    %cst_134 = arith.constant dense<0.000000e+00> : vector<128xf32>
    %180 = vector.multi_reduction <add>, %179, %cst_134 [0] : vector<8x128xf32> to vector<128xf32>
    %181 = vector.shape_cast %180 : vector<128xf32> to vector<1x128xf32>
    %182 = arith.addf %177, %181 : vector<1x128xf32>
    %c7_135 = arith.constant 7 : index
    %c0_136 = arith.constant 0 : index
    %183 = vector.load %arg6[%c7_135, %c0_136] : memref<8x128xf32, #tpu.memory_space<vmem>>, vector<1x128xf32>
    tpu.vector_store %arg6[%c7_135, %c0_136], %182 {strides = array<i32>} : memref<8x128xf32, #tpu.memory_space<vmem>>, vector<1x128xf32>,
    %c7_137 = arith.constant 7 : index
    %c0_138 = arith.constant 0 : index
    %184 = vector.load %arg7[%c7_137, %c0_138] : memref<8x128xf32, #tpu.memory_space<vmem>>, vector<1x128xf32>
    %cst_139 = arith.constant 0.000000e+00 : f32
    %185 = vector.broadcast %cst_139 : f32 to vector<8x128xf32>
    %186 = arith.select %169, %4, %185 : vector<8x128xi1>, vector<8x128xf32>
    %cst_140 = arith.constant dense<0.000000e+00> : vector<128xf32>
    %187 = vector.multi_reduction <add>, %186, %cst_140 [0] : vector<8x128xf32> to vector<128xf32>
    %188 = vector.shape_cast %187 : vector<128xf32> to vector<1x128xf32>
    %189 = arith.addf %184, %188 : vector<1x128xf32>
    %c7_141 = arith.constant 7 : index
    %c0_142 = arith.constant 0 : index
    %190 = vector.load %arg7[%c7_141, %c0_142] : memref<8x128xf32, #tpu.memory_space<vmem>>, vector<1x128xf32>
    tpu.vector_store %arg7[%c7_141, %c0_142], %189 {strides = array<i32>} : memref<8x128xf32, #tpu.memory_space<vmem>>, vector<1x128xf32>,
    %c0_i32_143 = arith.constant 0 : i32
    %191 = arith.cmpi eq, %arg0, %c0_i32_143 : i32
    %192 = arith.extui %191 : i1 to i32
    %c0_i32_144 = arith.constant 0 : i32
    %193 = arith.cmpi ne, %192, %c0_i32_144 : i32
    scf.if %193 {
      %c0_145 = arith.constant 0 : index
      %c0_146 = arith.constant 0 : index
      %194 = vector.load %arg5[%c0_145, %c0_146] : memref<8x128xf32, #tpu.memory_space<vmem>>, vector<8x128xf32>
      %cst_147 = arith.constant dense<0.000000e+00> : vector<8xf32>
      %195 = vector.multi_reduction <add>, %194, %cst_147 [1] : vector<8x128xf32> to vector<8xf32>
      %196 = vector.shape_cast %195 : vector<8xf32> to vector<8x1xf32>
      %c0_148 = arith.constant 0 : index
      %c0_149 = arith.constant 0 : index
      %197 = vector.load %arg6[%c0_148, %c0_149] : memref<8x128xf32, #tpu.memory_space<vmem>>, vector<8x128xf32>
      %cst_150 = arith.constant dense<0.000000e+00> : vector<8xf32>
      %198 = vector.multi_reduction <add>, %197, %cst_150 [1] : vector<8x128xf32> to vector<8xf32>
      %199 = vector.shape_cast %198 : vector<8xf32> to vector<8x1xf32>
      %c0_151 = arith.constant 0 : index
      %c0_152 = arith.constant 0 : index
      %200 = vector.load %arg7[%c0_151, %c0_152] : memref<8x128xf32, #tpu.memory_space<vmem>>, vector<8x128xf32>
      %cst_153 = arith.constant dense<0.000000e+00> : vector<8xf32>
      %201 = vector.multi_reduction <add>, %200, %cst_153 [1] : vector<8x128xf32> to vector<8xf32>
      %202 = vector.shape_cast %201 : vector<8xf32> to vector<8x1xf32>
      %cst_154 = arith.constant 2.000000e+00 : f32
      %203 = vector.broadcast %cst_154 : f32 to vector<8x1xf32>
      %204 = arith.mulf %203, %196 : vector<8x1xf32>
      %cst_155 = arith.constant 1.000000e+00 : f32
      %205 = vector.broadcast %cst_155 : f32 to vector<8x1xf32>
      %206 = arith.addf %204, %205 : vector<8x1xf32>
      %207 = arith.addf %199, %202 : vector<8x1xf32>
      %cst_156 = arith.constant 1.000000e+00 : f32
      %208 = vector.broadcast %cst_156 : f32 to vector<8x1xf32>
      %209 = arith.addf %207, %208 : vector<8x1xf32>
      %210 = arith.divf %206, %209 : vector<8x1xf32>
      %cst_157 = arith.constant 1.000000e+00 : f32
      %211 = vector.broadcast %cst_157 : f32 to vector<8x1xf32>
      %212 = arith.subf %211, %210 : vector<8x1xf32>
      %cst_158 = arith.constant dense<0.000000e+00> : vector<1xf32>
      %213 = vector.multi_reduction <add>, %212, %cst_158 [0] : vector<8x1xf32> to vector<1xf32>
      %214 = vector.shape_cast %213 : vector<1xf32> to vector<1x1xf32>
      %c0_159 = arith.constant 0 : index
      %c0_160 = arith.constant 0 : index
      %215 = vector.load %arg4[%c0_159, %c0_160] : memref<1x1xf32, #tpu.memory_space<vmem>>, vector<1x1xf32>
      tpu.vector_store %arg4[%c0_159, %c0_160], %214 {strides = array<i32>} : memref<1x1xf32, #tpu.memory_space<vmem>>, vector<1x1xf32>,
    } else {
    }
    return
  }
  func.func @transform_0(%arg0: i32) -> (i32, i32) {
    %c0_i32 = arith.constant 0 : i32
    %c0_i32_0 = arith.constant 0 : i32
    return %arg0, %c0_i32 : i32, i32
  }
  func.func @transform_1(%arg0: i32) -> (i32, i32) {
    %c0_i32 = arith.constant 0 : i32
    %c0_i32_0 = arith.constant 0 : i32
    return %arg0, %c0_i32 : i32, i32
  }
  func.func @transform_2(%arg0: i32) -> (i32, i32) {
    %c0_i32 = arith.constant 0 : i32
    %c0_i32_0 = arith.constant 0 : i32
    return %arg0, %c0_i32 : i32, i32
  }
  func.func @transform_3(%arg0: i32) -> (i32, i32) {
    %c0_i32 = arith.constant 0 : i32
    %c0_i32_0 = arith.constant 0 : i32
    %c0_i32_1 = arith.constant 0 : i32
    return %c0_i32, %c0_i32_0 : i32, i32
  }
}

</mosaic_0001>

<bundles_post_ra>
// kernel: tpu_custom_call.1
= control target key start
LH: loop header
LB: loop body
LE: loop exit
PB: predicated region body
PF: predicated region fallthrough
CT: control target
= control target key end

     0   :  { %8 = vsyncpa [#allocation6], 0  ;;  %s599_s0 = inlined_call_operand.hbm [shape: f32[8,128], index: 0, kind: input, shape index: {}]   ;;  %s600_s1 = inlined_call_operand.hbm [shape: f32[8,128], index: 1, kind: input, shape index: {}]   ;;  %s601_s2 = inlined_call_operand.hbm [shape: s32[8,128], index: 2, kind: input, shape index: {}]   ;;  %s602_s3 = inlined_call_operand.hbm [shape: f32[1,1], index: 3, kind: output, shape index: {}]  }
   0x1   :  { %9 = vsyncpa [#allocation9], 0  ;;  %s27_s14 = sshll.u32 %s600_s1, 4  ;;  %s28_s14 = int_to_ptr.hbm [resolvable:$true] %s27_s14 }
   0x2   :  { %10 = vsyncpa [#allocation7], 0  ;;  %s482_s15 = smov [#allocation8]   ;;  %s16_s19 = sshll.u32 %s599_s0, 4  ;;  %s17_s19 = int_to_ptr.hbm [resolvable:$true] %s16_s19 }
   0x3   :  { %s29_s16 = sshll.u32 %s482_s15, 4  ;;  %s483_s20 = smov [#allocation5]   ;;  %s30_s16 = int_to_ptr.vmem [resolvable:$true] %s29_s16 }
   0x4   :  { %32 = dma.hbm_to_vmem [thread:$0]  %s28_s14, 128, %s30_s16, [#allocation9]  }
   0x5   :  { %s18_s21 = sshll.u32 %s483_s20, 4  ;;  %s38_s24 = sshll.u32 %s601_s2, 4  ;;  %s19_s21 = int_to_ptr.vmem [resolvable:$true] %s18_s21  ;;  %s39_s24 = int_to_ptr.hbm [resolvable:$true] %s38_s24 }
   0x6   :  { %21 = dma.hbm_to_vmem [thread:$0]  %s17_s19, 128, %s19_s21, [#allocation6]  }
   0x7   :  { %s484_s1 = smov [#allocation10]  }
   0x8   :  { %s40_s25 = sshll.u32 %s484_s1, 4  ;;  %s41_s25 = int_to_ptr.vmem [resolvable:$true] %s40_s25 }
   0x9   :  { %43 = dma.hbm_to_vmem [thread:$0]  %s39_s24, 128, %s41_s25, [#allocation9]  }
   0xa   :  { %476 = dma.done.wait [#allocation6], 128  }
   0xb   :  { %477 = vsyncadd [#allocation6], 4294967168 }
   0xc   :  { %478 = dma.done.wait [#allocation9], 256  }
   0xd   :  { %479 = vsyncadd [#allocation9], 4294967040  ;;  %v485_v0 = vmov 0.0   ;;  %v516_v1 = vld [vmem:[#allocation5] sm:$0xff]  ;;  %v518_v2 = vld [vmem:[#allocation10] sm:$0xff]  ;;  %s486_s0 = smov [#allocation11]  }
   0xe   :  { %61 = vst [vmem:[#allocation3] sm:$0xff] %v485_v0  ;;  %vm67_vm0 = vcmp.eq.s32.totalorder %v518_v2, 0  ;;  %vm98_vm1 = vcmp.eq.s32.totalorder %v518_v2, 1  ;;  %vm129_vm2 = vcmp.eq.s32.totalorder %v518_v2, 2  ;;  %vm160_vm3 = vcmp.eq.s32.totalorder %v518_v2, 3  ;;  %v552_v53 = vld [vmem:[#allocation8] sm:$0xff] }
   0xf   :  { %60 = vst [vmem:[#allocation2] sm:$0xff] %v485_v0  ;;  %v79_v3 = vsel %vm67_vm0, %v516_v1, 0.0  ;;  %v110_v4 = vsel %vm98_vm1, %v516_v1, 0.0  ;;  %v141_v7 = vsel %vm129_vm2, %v516_v1, 0.0  ;;  %v172_v8 = vsel %vm160_vm3, %v516_v1, 0.0  ;;  %s360_s2 = sshll.u32 %s486_s0, 4  ;;  %s361_s2 = int_to_ptr.vmem [resolvable:$true] %s360_s2 }
  0x10   :  { %62 = vst [vmem:[#allocation4] sm:$0xff] %v485_v0  ;;  %v80_v5 = vrot.slane %v79_v3, 4  ;;  %v111_v6 = vrot.slane %v110_v4, 4  ;;  %v142_v9 = vrot.slane %v141_v7, 4  ;;  %v173_v10 = vrot.slane %v172_v8, 4  ;;  %s362_s28 = sshll.u32 %s602_s3, 4  ;;  %s363_s28 = int_to_ptr.hbm [resolvable:$true] %s362_s28 }
  0x11   :  { %vm191_vm4 = vcmp.eq.s32.totalorder %v518_v2, 4  ;;  %vm222_vm5 = vcmp.eq.s32.totalorder %v518_v2, 5  ;;  %vm253_vm6 = vcmp.eq.s32.totalorder %v518_v2, 6  ;;  %vm284_vm7 = vcmp.eq.s32.totalorder %v518_v2, 7 }
  0x12   :  { %v81_v11 = vadd.f32 %v80_v5, %v79_v3  ;;  %v112_v12 = vadd.f32 %v111_v6, %v110_v4  ;;  %v203_v13 = vsel %vm191_vm4, %v516_v1, 0.0  ;;  %v234_v14 = vsel %vm222_vm5, %v516_v1, 0.0 }
  0x13   :  { %v143_v15 = vadd.f32 %v142_v9, %v141_v7  ;;  %v174_v16 = vadd.f32 %v173_v10, %v172_v8  ;;  %v204_v17 = vrot.slane %v203_v13, 4  ;;  %v235_v18 = vrot.slane %v234_v14, 4 }
  0x14   :  { %v82_v19 = vrot.slane %v81_v11, 2  ;;  %v113_v20 = vrot.slane %v112_v12, 2  ;;  %v265_v27 = vsel %vm253_vm6, %v516_v1, 0.0  ;;  %v296_v28 = vsel %vm284_vm7, %v516_v1, 0.0 }
  0x15   :  { %v144_v21 = vrot.slane %v143_v15, 2  ;;  %v175_v22 = vrot.slane %v174_v16, 2  ;;  %v205_v23 = vadd.f32 %v204_v17, %v203_v13  ;;  %v236_v24 = vadd.f32 %v235_v18, %v234_v14  ;;  %v78_v37 = vld [vmem:[#allocation3] sm:$0x1]  ;;  %v109_v38 = vld [vmem:[#allocation3 + $0x1] sm:$0x1] }
  0x16   :  { %v83_v25 = vadd.f32 %v82_v19, %v81_v11  ;;  %v114_v26 = vadd.f32 %v113_v20, %v112_v12  ;;  %v266_v35 = vrot.slane %v265_v27, 4  ;;  %v297_v36 = vrot.slane %v296_v28, 4  ;;  %v140_v45 = vld [vmem:[#allocation3 + $0x2] sm:$0x1]  ;;  %v171_v46 = vld [vmem:[#allocation3 + $0x3] sm:$0x1] }
  0x17   :  { %v145_v29 = vadd.f32 %v144_v21, %v143_v15  ;;  %v176_v30 = vadd.f32 %v175_v22, %v174_v16  ;;  %v206_v31 = vrot.slane %v205_v23, 2  ;;  %v237_v32 = vrot.slane %v236_v24, 2  ;;  %v202_v56 = vld [vmem:[#allocation3 + $0x4] sm:$0x1]  ;;  %v233_v57 = vld [vmem:[#allocation3 + $0x5] sm:$0x1] }
  0x18   :  { %v84_v33 = vrot.slane %v83_v25, 1  ;;  %v115_v34 = vrot.slane %v114_v26, 1  ;;  %v267_v47 = vadd.f32 %v266_v35, %v265_v27  ;;  %v298_v48 = vadd.f32 %v297_v36, %v296_v28  ;;  %v264_v8 = vld [vmem:[#allocation3 + $0x6] sm:$0x1]  ;;  %v295_v15 = vld [vmem:[#allocation3 + $0x7] sm:$0x1] }
  0x19   :  { %v146_v39 = vrot.slane %v145_v29, 1  ;;  %v177_v40 = vrot.slane %v176_v30, 1  ;;  %v207_v41 = vadd.f32 %v206_v31, %v205_v23  ;;  %v238_v42 = vadd.f32 %v237_v32, %v236_v24 }
  0x1a   :  { %v85_v43 = vadd.f32 %v84_v33, %v83_v25  ;;  %v116_v44 = vadd.f32 %v115_v34, %v114_v26  ;;  %v268_v58 = vrot.slane %v267_v47, 2  ;;  %v299_v59 = vrot.slane %v298_v48, 2 }
  0x1b   :  { %v147_v49 = vadd.f32 %v146_v39, %v145_v29  ;;  %v178_v50 = vadd.f32 %v177_v40, %v176_v30  ;;  %v208_v51 = vrot.slane %v207_v41, 1  ;;  %v239_v52 = vrot.slane %v238_v42, 1  ;;  %v88_v40 = vld [vmem:[#allocation4] sm:$0x1] }
  0x1c   :  { %v86_v54 = vadd.f32 %v85_v43, %v78_v37  ;;  %v117_v55 = vadd.f32 %v116_v44, %v109_v38  ;;  %v269_v0 = vadd.f32 %v268_v58, %v267_v47  ;;  %v300_v3 = vadd.f32 %v299_v59, %v298_v48 }
  0x1d   :  { %v148_v60 = vadd.f32 %v147_v49, %v140_v45  ;;  %v179_v61 = vadd.f32 %v178_v50, %v171_v46  ;;  %v209_v62 = vadd.f32 %v208_v51, %v207_v41  ;;  %v240_v63 = vadd.f32 %v239_v52, %v238_v42  ;;  %v119_v45 = vld [vmem:[#allocation4 + $0x1] sm:$0x1] }
  0x1e   :  { %87 = vst [vmem:[#allocation3] sm:$0x1] %v86_v54  ;;  %v89_v4 = vsel %vm67_vm0, %v552_v53, 0.0  ;;  %v120_v5 = vsel %vm98_vm1, %v552_v53, 0.0  ;;  %v270_v11 = vrot.slane %v269_v0, 1  ;;  %v301_v12 = vrot.slane %v300_v3, 1 }
  0x1f   :  { %118 = vst [vmem:[#allocation3 + $0x1] sm:$0x1] %v117_v55  ;;  %v210_v6 = vadd.f32 %v209_v62, %v202_v56  ;;  %v241_v7 = vadd.f32 %v240_v63, %v233_v57  ;;  %v90_v9 = vrot.slane %v89_v4, 4  ;;  %v121_v10 = vrot.slane %v120_v5, 4  ;;  %v150_v55 = vld [vmem:[#allocation4 + $0x2] sm:$0x1] }
  0x20   :  { %149 = vst [vmem:[#allocation3 + $0x2] sm:$0x1] %v148_v60  ;;  %v151_v13 = vsel %vm129_vm2, %v552_v53, 0.0  ;;  %v182_v14 = vsel %vm160_vm3, %v552_v53, 0.0  ;;  %v271_v20 = vadd.f32 %v270_v11, %v269_v0  ;;  %v302_v21 = vadd.f32 %v301_v12, %v300_v3  ;;  %v181_v56 = vld [vmem:[#allocation4 + $0x3] sm:$0x1] }
  0x21   :  { %180 = vst [vmem:[#allocation3 + $0x3] sm:$0x1] %v179_v61  ;;  %v91_v16 = vadd.f32 %v90_v9, %v89_v4  ;;  %v122_v17 = vadd.f32 %v121_v10, %v120_v5  ;;  %v152_v18 = vrot.slane %v151_v13, 4  ;;  %v183_v19 = vrot.slane %v182_v14, 4  ;;  %v212_v9 = vld [vmem:[#allocation4 + $0x4] sm:$0x1] }
  0x22   :  { %211 = vst [vmem:[#allocation3 + $0x4] sm:$0x1] %v210_v6  ;;  %v213_v22 = vsel %vm191_vm4, %v552_v53, 0.0  ;;  %v244_v23 = vsel %vm222_vm5, %v552_v53, 0.0  ;;  %v272_v28 = vadd.f32 %v271_v20, %v264_v8  ;;  %v303_v29 = vadd.f32 %v302_v21, %v295_v15  ;;  %v243_v10 = vld [vmem:[#allocation4 + $0x5] sm:$0x1] }
  0x23   :  { %242 = vst [vmem:[#allocation3 + $0x5] sm:$0x1] %v241_v7  ;;  %v92_v24 = vrot.slane %v91_v16, 2  ;;  %v123_v25 = vrot.slane %v122_v17, 2  ;;  %v153_v26 = vadd.f32 %v152_v18, %v151_v13  ;;  %v184_v27 = vadd.f32 %v183_v19, %v182_v14  ;;  %v274_v21 = vld [vmem:[#allocation4 + $0x6] sm:$0x1] }
  0x24   :  { %v214_v30 = vrot.slane %v213_v22, 4  ;;  %v245_v31 = vrot.slane %v244_v23, 4  ;;  %273 = vst [vmem:[#allocation3 + $0x6] sm:$0x1] %v272_v28  ;;  %v275_v38 = vsel %vm253_vm6, %v552_v53, 0.0  ;;  %v306_v39 = vsel %vm284_vm7, %v552_v53, 0.0 }
  0x25   :  { %v93_v32 = vadd.f32 %v92_v24, %v91_v16  ;;  %v124_v33 = vadd.f32 %v123_v25, %v122_v17  ;;  %v154_v34 = vrot.slane %v153_v26, 2  ;;  %v185_v35 = vrot.slane %v184_v27, 2  ;;  %304 = vst [vmem:[#allocation3 + $0x7] sm:$0x1] %v303_v29  ;;  %v305_v24 = vld [vmem:[#allocation4 + $0x7] sm:$0x1] }
  0x26   :  { %v215_v36 = vadd.f32 %v214_v30, %v213_v22  ;;  %v246_v37 = vadd.f32 %v245_v31, %v244_v23  ;;  %v276_v48 = vrot.slane %v275_v38, 4  ;;  %v307_v49 = vrot.slane %v306_v39, 4 }
  0x27   :  { %v94_v41 = vrot.slane %v93_v32, 1  ;;  %v125_v42 = vrot.slane %v124_v33, 1  ;;  %v155_v43 = vadd.f32 %v154_v34, %v153_v26  ;;  %v186_v44 = vadd.f32 %v185_v35, %v184_v27 }
  0x28   :  { %v216_v46 = vrot.slane %v215_v36, 2  ;;  %v247_v47 = vrot.slane %v246_v37, 2  ;;  %v277_v59 = vadd.f32 %v276_v48, %v275_v38  ;;  %v308_v60 = vadd.f32 %v307_v49, %v306_v39 }
  0x29   :  { %v95_v50 = vadd.f32 %v94_v41, %v93_v32  ;;  %v126_v51 = vadd.f32 %v125_v42, %v124_v33  ;;  %v156_v52 = vrot.slane %v155_v43, 1  ;;  %v187_v54 = vrot.slane %v186_v44, 1 }
  0x2a   :  { %v217_v57 = vadd.f32 %v216_v46, %v215_v36  ;;  %v248_v58 = vadd.f32 %v247_v47, %v246_v37  ;;  %v278_v5 = vrot.slane %v277_v59, 2  ;;  %v309_v6 = vrot.slane %v308_v60, 2 }
  0x2b   :  { %v96_v61 = vadd.f32 %v95_v50, %v88_v40  ;;  %v127_v62 = vadd.f32 %v126_v51, %v119_v45  ;;  %v157_v63 = vadd.f32 %v156_v52, %v155_v43  ;;  %v188_v0 = vadd.f32 %v187_v54, %v186_v44 }
  0x2c   :  { %v218_v3 = vrot.slane %v217_v57, 1  ;;  %v249_v4 = vrot.slane %v248_v58, 1  ;;  %v66_v11 = vmul.f32 %v552_v53, %v516_v1  ;;  %v321_v12 = vld [vmem:[#allocation3] sm:$0xff]  ;;  %v279_v15 = vadd.f32 %v278_v5, %v277_v59 }
  0x2d   :  { %97 = vst [vmem:[#allocation4] sm:$0x1] %v96_v61  ;;  %v158_v7 = vadd.f32 %v157_v63, %v150_v55  ;;  %v189_v8 = vadd.f32 %v188_v0, %v181_v56  ;;  %v310_v16 = vadd.f32 %v309_v6, %v308_v60  ;;  %322 = vadd.xlane.f32.xlu0 %v321_v12  ;;  %v99_v63 = vld [vmem:[#allocation2 + $0x1] sm:$0x1]  ;;  %v130_v0 = vld [vmem:[#allocation2 + $0x2] sm:$0x1] }
  0x2e   :  { %128 = vst [vmem:[#allocation4 + $0x1] sm:$0x1] %v127_v62  ;;  %v219_v13 = vadd.f32 %v218_v3, %v217_v57  ;;  %v250_v14 = vadd.f32 %v249_v4, %v248_v58  ;;  %v69_v17 = vsel %vm67_vm0, %v66_v11, 0.0  ;;  %v100_v18 = vsel %vm98_vm1, %v66_v11, 0.0  ;;  %v68_v58 = vld [vmem:[#allocation2] sm:$0x1] }
  0x2f   :  { %159 = vst [vmem:[#allocation4 + $0x2] sm:$0x1] %v158_v7  ;;  %v131_v19 = vsel %vm129_vm2, %v66_v11, 0.0  ;;  %v162_v1 = vsel %vm160_vm3, %v66_v11, 0.0  ;;  %v280_v22 = vrot.slane %v279_v15, 1  ;;  %v311_v23 = vrot.slane %v310_v16, 1 }
  0x30   :  { %190 = vst [vmem:[#allocation4 + $0x3] sm:$0x1] %v189_v8  ;;  %v220_v53 = vadd.f32 %v219_v13, %v212_v9  ;;  %v251_v20 = vadd.f32 %v250_v14, %v243_v10  ;;  %v70_v25 = vrot.slane %v69_v17, 4  ;;  %v101_v26 = vrot.slane %v100_v18, 4  ;;  %v161_v3 = vld [vmem:[#allocation2 + $0x3] sm:$0x1] }
  0x31   :  { %v132_v27 = vrot.slane %v131_v19, 4  ;;  %v163_v28 = vrot.slane %v162_v1, 4  ;;  %v281_v29 = vadd.f32 %v280_v22, %v279_v15  ;;  %v312_v30 = vadd.f32 %v311_v23, %v310_v16 }
  0x32   :  { %221 = vst [vmem:[#allocation4 + $0x4] sm:$0x1] %v220_v53  ;;  %v193_v31 = vsel %vm191_vm4, %v66_v11, 0.0  ;;  %v224_v32 = vsel %vm222_vm5, %v66_v11, 0.0  ;;  %v71_v33 = vadd.f32 %v70_v25, %v69_v17  ;;  %v102_v34 = vadd.f32 %v101_v26, %v100_v18 }
  0x33   :  { %252 = vst [vmem:[#allocation4 + $0x5] sm:$0x1] %v251_v20  ;;  %v133_v35 = vadd.f32 %v132_v27, %v131_v19  ;;  %v164_v36 = vadd.f32 %v163_v28, %v162_v1  ;;  %v282_v37 = vadd.f32 %v281_v29, %v274_v21  ;;  %v313_v38 = vadd.f32 %v312_v30, %v305_v24  ;;  %v192_v19 = vld [vmem:[#allocation2 + $0x4] sm:$0x1]  ;;  %v223_v1 = vld [vmem:[#allocation2 + $0x5] sm:$0x1] }
  0x34   :  { %v194_v39 = vrot.slane %v193_v31, 4  ;;  %v225_v40 = vrot.slane %v224_v32, 4  ;;  %v72_v41 = vrot.slane %v71_v33, 2  ;;  %v103_v42 = vrot.slane %v102_v34, 2  ;;  %v254_v28 = vld [vmem:[#allocation2 + $0x6] sm:$0x1] }
  0x35   :  { %v134_v43 = vrot.slane %v133_v35, 2  ;;  %v165_v44 = vrot.slane %v164_v36, 2  ;;  %283 = vst [vmem:[#allocation4 + $0x6] sm:$0x1] %v282_v37  ;;  %v255_v47 = vsel %vm253_vm6, %v66_v11, 0.0  ;;  %v286_v48 = vsel %vm284_vm7, %v66_v11, 0.0 }
  0x36   :  { %v195_v45 = vadd.f32 %v194_v39, %v193_v31  ;;  %v226_v46 = vadd.f32 %v225_v40, %v224_v32  ;;  %314 = vst [vmem:[#allocation4 + $0x7] sm:$0x1] %v313_v38  ;;  %v73_v49 = vadd.f32 %v72_v41, %v71_v33  ;;  %v104_v50 = vadd.f32 %v103_v42, %v102_v34  ;;  %v285_v29 = vld [vmem:[#allocation2 + $0x7] sm:$0x1] }
  0x37   :  { %v135_v51 = vadd.f32 %v134_v43, %v133_v35  ;;  %v166_v52 = vadd.f32 %v165_v44, %v164_v36  ;;  %v256_v56 = vrot.slane %v255_v47, 4  ;;  %v287_v57 = vrot.slane %v286_v48, 4 }
  0x38   :  { %v196_v54 = vrot.slane %v195_v45, 2  ;;  %v227_v55 = vrot.slane %v226_v46, 2  ;;  %v74_v59 = vrot.slane %v73_v49, 1  ;;  %v105_v60 = vrot.slane %v104_v50, 1 }
  0x39   :  { %v136_v61 = vrot.slane %v135_v51, 1  ;;  %v167_v62 = vrot.slane %v166_v52, 1  ;;  %v257_v5 = vadd.f32 %v256_v56, %v255_v47  ;;  %v288_v6 = vadd.f32 %v287_v57, %v286_v48 }
  0x3a   :  { %v197_v4 = vadd.f32 %v196_v54, %v195_v45  ;;  %v228_v2 = vadd.f32 %v227_v55, %v226_v46  ;;  %v75_v7 = vadd.f32 %v74_v59, %v73_v49  ;;  %v106_v8 = vadd.f32 %v105_v60, %v104_v50 }
  0x3b   :  { %v137_v9 = vadd.f32 %v136_v61, %v135_v51  ;;  %v168_v10 = vadd.f32 %v167_v62, %v166_v52  ;;  %v258_v13 = vrot.slane %v257_v5, 2  ;;  %v289_v14 = vrot.slane %v288_v6, 2 }
  0x3c   :  { %v198_v11 = vrot.slane %v197_v4, 1  ;;  %v229_v12 = vrot.slane %v228_v2, 1  ;;  %v76_v15 = vadd.f32 %v75_v7, %v68_v58  ;;  %v107_v16 = vadd.f32 %v106_v8, %v99_v63 }
  0x3d   :  { %v138_v17 = vadd.f32 %v137_v9, %v130_v0  ;;  %v169_v18 = vadd.f32 %v168_v10, %v161_v3  ;;  %v324_v53 = vld [vmem:[#allocation4] sm:$0xff]  ;;  %v259_v22 = vadd.f32 %v258_v13, %v257_v5  ;;  %v290_v23 = vadd.f32 %v289_v14, %v288_v6 }
  0x3e   :  { %v199_v20 = vadd.f32 %v198_v11, %v197_v4  ;;  %v230_v21 = vadd.f32 %v229_v12, %v228_v2  ;;  %325 = vadd.xlane.f32.xlu0 %v324_v53  ;;  %77 = vst [vmem:[#allocation2] sm:$0x1] %v76_v15  ;;  %vm353_vm12 = vcmask 0  }
  0x3f   :  { %108 = vst [vmem:[#allocation2 + $0x1] sm:$0x1] %v107_v16  ;;  %v260_v26 = vrot.slane %v259_v22, 1  ;;  %v291_v27 = vrot.slane %v290_v23, 1 }
  0x40   :  { %v200_v24 = vadd.f32 %v199_v20, %v192_v19  ;;  %v231_v25 = vadd.f32 %v230_v21, %v223_v1  ;;  %139 = vst [vmem:[#allocation2 + $0x2] sm:$0x1] %v138_v17 }
  0x41   :  { %170 = vst [vmem:[#allocation2 + $0x3] sm:$0x1] %v169_v18  ;;  %v261_v30 = vadd.f32 %v260_v26, %v259_v22  ;;  %v292_v31 = vadd.f32 %v291_v27, %v290_v23 }
  0x42   :  { %201 = vst [vmem:[#allocation2 + $0x4] sm:$0x1] %v200_v24 }
  0x43   :  { %232 = vst [vmem:[#allocation2 + $0x5] sm:$0x1] %v231_v25  ;;  %v262_v32 = vadd.f32 %v261_v30, %v254_v28  ;;  %v293_v33 = vadd.f32 %v292_v31, %v285_v29 }
  0x45   :  { %263 = vst [vmem:[#allocation2 + $0x6] sm:$0x1] %v262_v32 }
  0x46   :  { %294 = vst [vmem:[#allocation2 + $0x7] sm:$0x1] %v293_v33 }
  0x4d   :  { %v318_v34 = vld [vmem:[#allocation2] sm:$0xff] }
  0x4e   :  { %319 = vadd.xlane.f32.xlu1 %v318_v34 }
  0xa0   :  { %v323_v35 = vpop.xlane.xlu0 %322 }
  0xb1   :  { %v326_v36 = vpop.xlane.xlu0 %325 }
  0xb2   :  { %v329_v37 = vadd.f32 %v326_v36, %v323_v35 }
  0xb4   :  { %v330_v38 = vadd.f32 1.0, %v329_v37 }
  0xb6   :  { %378 = vrcp.f32 %v330_v38  ;;  %v342_v42 = vand.u32 2147483648, %v330_v38  ;;  %v340_v44 = vand.u32 2147483647, %v330_v38  ;;  %vm336_vm9 = vweird.f32 %v330_v38 }
  0xb8   :  { %v343_v48 = vor.u32 1.1754944e-38, %v342_v42  ;;  %vm341_vm11 = vcmp.eq.f32.partialorder %v340_v44, 8.507059e+37 }
  0xbc   :  { %v379_v39 = vpop.eup %378 }
  0xbd   :  { %v332_v40 = vmul.f32 %v379_v39, %v330_v38  ;;  %vm337_vm8 = vweird.f32 %v379_v39 }
  0xbe   :  { %vm338_vm10 = vmor %vm336_vm9, %vm337_vm8 }
  0xbf   :  { %v333_v41 = vsub.f32 1.0, %v332_v40 }
  0xc1   :  { %v334_v43 = vmul.f32 %v379_v39, %v333_v41  ;;  %v320_v45 = vpop.xlane.xlu1 %319 }
  0xc2   :  { %v327_v46 = vmul.f32 2.0, %v320_v45 }
  0xc3   :  { %v335_v47 = vadd.f32 %v379_v39, %v334_v43 }
  0xc4   :  { %v328_v49 = vadd.f32 1.0, %v327_v46 }
  0xc5   :  { %v339_v50 = vsel %vm338_vm10, %v379_v39, %v335_v47 }
  0xc6   :  { %v344_v51 = vsel %vm341_vm11, %v343_v48, %v339_v50 }
  0xc7   :  { %v345_v52 = vmul.f32 %v344_v51, %v328_v49 }
  0xc9   :  { %v346_v54 = vsub.f32 1.0, %v345_v52 }
  0xcb   :  { %v347_v55 = vrot.slane %v346_v54, 4 }
  0xcd   :  { %v348_v56 = vadd.f32 %v347_v55, %v346_v54 }
  0xcf   :  { %v349_v57 = vrot.slane %v348_v56, 2 }
  0xd1   :  { %v350_v58 = vadd.f32 %v349_v57, %v348_v56 }
  0xd3   :  { %v351_v59 = vrot.slane %v350_v58, 1 }
  0xd5   :  { %v352_v60 = vadd.f32 %v351_v59, %v350_v58 }
  0xd7   :  { %354 = vst.msk [vmem:[#allocation11] sm:$0x1] %vm353_vm12, %v352_v60 }
  0xd8   :  { %365 = dma.vmem_to_hbm [thread:$0]  %s361_s2, 16, %s363_s28, [#allocation7]  }
  0xd9   :  { %480 = dma.done.wait [#allocation7], 16  }
  0xda   :  { %481 = vsyncadd [#allocation7], 4294967280 }
  0xdb   :  { %370 = vsyncpa [#allocation6], 1 }
  0xdc   :  { %371 = vsyncpa [#allocation9], 1 }
  0xdd   :  { %372 = vsyncpa [#allocation7], 1 }

</bundles_post_ra>
